<compile_context>
chip_gen: v7x
topology: tpu7x:2x2x1
jax: 0.10.0
libtpu: 0.0.40
codegen_flags: <defaults>
</compile_context>

<pallas_src>
import jax
import jax.numpy as jnp
from jax.experimental import pallas as pl
from jax.experimental.pallas import tpu as pltpu

GAMMA = 2                 # positive integer focal exponent
ALPHA = 0.25
LANES = 128
TILE_BYTE_BUDGET = 4 << 20   # ~4 MiB of logits per pipeline buffer
MAX_TILE_ROWS = 8192         # secondary cap on sublane-rows per tile
ROW_ALIGN = 32               # multiple of 32 covers f32/bf16 logits and int8 targets tiling

assert isinstance(GAMMA, int) and GAMMA >= 1, "kernel assumes a positive integer gamma"


def _round_up(x, m):
    return (x + m - 1) // m * m


def _default_ncores():
    # 2 TensorCores per chip only on v7x; a >1 leading axis is pure serial
    # overhead on v5e/v6e.
    try:
        kind = jax.devices()[0].device_kind.lower()
    except Exception:
        return 1
    return 2 if ("v7" in kind or "7x" in kind) else 1


def _focal_kernel(x_ref, t_ref, o_ref):
    # x_ref : (C, TR, 128) logits slab, class-major, samples lane-dense (caller dtype)
    # t_ref : (TR, 128) int8 targets, -1 marks padded samples
    # o_ref : (1, 8, 128) f32 per-core resident accumulator (over grid axis j)
    j = pl.program_id(1)

    @pl.when(j == 0)
    def _():
        o_ref[...] = jnp.zeros_like(o_ref)

    tgt = t_ref[...].astype(jnp.int32)                 # unpack int8 -> int32 once
    valid = tgt >= 0

    c = x_ref.shape[0]
    if c == 2:
        # Logistic fast path: never materializes lse / one-hot.
        x0 = x_ref[0].astype(jnp.float32)              # (TR, 128)
        x1 = x_ref[1].astype(jnp.float32)
        base = x0 - x1
        d = jnp.where(tgt == 0, base, -base)           # x_target - x_other
        e = jnp.exp(-jnp.abs(d))
        ce = jnp.maximum(-d, 0.0) + jnp.log(1.0 + e)   # stable -log sigmoid(d)
        # 1 - pt = sigmoid(-d), computed without cancellation
        w = jnp.where(d >= 0, e, 1.0) / (1.0 + e)
    else:
        # Generic small-C path: unrolled over Python-constant class ids (no iota scratch).
        xs = [x_ref[k].astype(jnp.float32) for k in range(c)]
        m = xs[0]
        for k in range(1, c):
            m = jnp.maximum(m, xs[k])
        se = jnp.zeros_like(m)
        x_t = jnp.zeros_like(m)
        for k in range(c):
            se = se + jnp.exp(xs[k] - m)
            x_t = jnp.where(tgt == k, xs[k], x_t)
        ce = m + jnp.log(se) - x_t                     # per-sample cross entropy
        pt = jnp.exp(-ce)
        w = 1.0 - pt

    wg = w
    for _ in range(GAMMA - 1):                         # gamma==2 -> one extra multiply
        wg = wg * w
    fl = jnp.where(valid, ALPHA * wg * ce, 0.0)        # drop padded samples

    # Lane/sublane-dense partial-sum accumulation: pure vreg adds, no XLU reduce
    # and no masked sub-vreg store inside the hot loop.
    o_ref[...] += fl.reshape(-1, 8, LANES).sum(axis=0)[None]


def focal_loss(logits, targets, *, max_tile_rows=MAX_TILE_ROWS):
    """logits: (N, C) float array (f32 or bf16), targets: (N,) int. Returns scalar f32."""
    n, c = logits.shape
    itemsize = jnp.dtype(logits.dtype).itemsize
    ncores = _default_ncores()

    rows = pl.cdiv(n, LANES)                           # number of 128-sample lane groups
    budget_rows = max(ROW_ALIGN,
                      (TILE_BYTE_BUDGET // (c * LANES * itemsize)) // ROW_ALIGN * ROW_ALIGN)
    tr = max(ROW_ALIGN, min(budget_rows, max_tile_rows // ROW_ALIGN * ROW_ALIGN))
    tr = min(tr, _round_up(rows, ROW_ALIGN))           # don't make tiles bigger than the data
    rows_pad = _round_up(rows, ncores * tr)
    n_pad = rows_pad * LANES
    tiles_per_core = rows_pad // (ncores * tr)

    # Layout plumbing: class-major, lane-dense-in-samples slabs. Logits stay in the
    # caller's dtype in HBM (bf16 halves DMA traffic); cast to f32 happens in-kernel.
    # TODO(synk): this transpose+pad+reshape is one extra XLA HBM round trip; have the
    # upstream producer emit class-major logits (or fuse the transpose there) to remove it.
    x3 = jnp.pad(logits.T, ((0, 0), (0, n_pad - n))).reshape(c, rows_pad, LANES)
    tdtype = jnp.int8 if c <= 127 else jnp.int32
    t2 = jnp.pad(targets.astype(tdtype), (0, n_pad - n),
                 constant_values=-1).reshape(rows_pad, LANES)

    # TODO(synk): for very large class counts (C*128*itemsize >> tile budget) the class
    # axis should also be tiled (pad C to 128, mask with -inf) and the target-logit gather
    # done as a one-hot MXU matmul; not needed for the module's default num_classes=2.
    # TODO(synk): on v7x, verify in xprof that the leading axis shards across both
    # TensorCores; if not, switch its semantics to pltpu.CORE_PARALLEL.
    partials = pl.pallas_call(
        _focal_kernel,
        out_shape=jax.ShapeDtypeStruct((ncores, 8, LANES), jnp.float32),
        grid_spec=pltpu.PrefetchScalarGridSpec(
            num_scalar_prefetch=0,
            grid=(ncores, tiles_per_core),
            in_specs=[
                pl.BlockSpec((c, tr, LANES),
                             lambda i, j: (0, i * tiles_per_core + j, 0)),
                pl.BlockSpec((tr, LANES),
                             lambda i, j: (i * tiles_per_core + j, 0)),
            ],
            out_specs=pl.BlockSpec((1, 8, LANES), lambda i, j: (i, 0, 0)),
        ),
        compiler_params=pltpu.CompilerParams(
            dimension_semantics=("parallel", "arbitrary"),
            vmem_limit_bytes=32 << 20),
    )(x3, t2)

    # mean over the TRUE sample count (padded rows were masked out in-kernel)
    return jnp.sum(partials) / n


def focal_loss_ref(logits, targets):
    # pure-JAX reference mirroring torch.nn.functional.cross_entropy + focal weighting
    logp = jax.nn.log_softmax(logits.astype(jnp.float32), axis=-1)
    ce = -jnp.take_along_axis(logp, targets[:, None].astype(jnp.int32), axis=-1)[:, 0]
    pt = jnp.exp(-ce)
    return jnp.mean(ALPHA * (1.0 - pt) ** GAMMA * ce)


if __name__ == "__main__":
    key = jax.random.PRNGKey(0)
    k1, k2, k3, k4, k5, k6 = jax.random.split(key, 6)

    # primary config: binary classification (module default num_classes=2),
    # N deliberately not a multiple of 128 to exercise the padding/mask path.
    N1, C1 = 300, 2
    logits1 = jax.random.normal(k1, (N1, C1), dtype=jnp.float32)
    targets1 = jax.random.randint(k2, (N1,), 0, C1, dtype=jnp.int32)
    out1 = jax.block_until_ready(focal_loss(logits1, targets1))
    ref1 = focal_loss_ref(logits1, targets1)
    if not jnp.allclose(out1, ref1, atol=1e-5, rtol=1e-5):
        raise AssertionError(f"mismatch (C=2): kernel={out1} ref={ref1}")

    # secondary config: more classes + bf16 logits kept in HBM (cast to f32 in-kernel)
    N2, C2 = 77, 4
    logits2 = jax.random.normal(k3, (N2, C2), dtype=jnp.float32).astype(jnp.bfloat16)
    targets2 = jax.random.randint(k4, (N2,), 0, C2, dtype=jnp.int32)
    out2 = jax.block_until_ready(focal_loss(logits2, targets2))
    ref2 = focal_loss_ref(logits2, targets2)
    if not jnp.allclose(out2, ref2, atol=1e-5, rtol=1e-5):
        raise AssertionError(f"mismatch (C=4, bf16): kernel={out2} ref={ref2}")

    # multi-tile config: small forced tile so the resident-accumulator grid path
    # (several j steps per core, partially padded last tile) is exercised.
    N3, C3 = 8300, 2
    logits3 = jax.random.normal(k5, (N3, C3), dtype=jnp.float32)
    targets3 = jax.random.randint(k6, (N3,), 0, C3, dtype=jnp.int32)
    out3 = jax.block_until_ready(focal_loss(logits3, targets3, max_tile_rows=32))
    ref3 = focal_loss_ref(logits3, targets3)
    if not jnp.allclose(out3, ref3, atol=1e-5, rtol=1e-5):
        raise AssertionError(f"mismatch (multi-tile): kernel={out3} ref={ref3}")

    print("KERNEL_OK")
</pallas_src>

<mosaic_0001>
module attributes {stable_mosaic.version = 11 : i64} {
  func.func @_focal_kernel(%arg0: i32, %arg1: i32, %arg2: memref<2x32x128xf32, #tpu.memory_space<vmem>>, %arg3: memref<32x128xi8, #tpu.memory_space<vmem>>, %arg4: memref<1x8x128xf32, #tpu.memory_space<vmem>>) attributes {dimension_semantics = [#tpu.dimension_semantics<parallel>, #tpu.dimension_semantics<arbitrary>], iteration_bounds = array<i64: 1, 1>, scalar_prefetch = 0 : i64, scratch_operands = 0 : i64, tpu.core_type = #tpu.core_type<tc>, window_params = [{transform_indices = @transform_0, window_bounds = array<i64: 2, 32, 128>}, {transform_indices = @transform_1, window_bounds = array<i64: 32, 128>}, {transform_indices = @transform_2, window_bounds = array<i64: 1, 8, 128>}]} {
    %c0_i32 = arith.constant 0 : i32
    %0 = arith.cmpi eq, %arg1, %c0_i32 : i32
    %1 = arith.extui %0 : i1 to i32
    %c0_i32_0 = arith.constant 0 : i32
    %2 = arith.cmpi ne, %1, %c0_i32_0 : i32
    scf.if %2 {
      %cst_25 = arith.constant 0.000000e+00 : f32
      %48 = vector.broadcast %cst_25 : f32 to vector<1x8x128xf32>
      %c0_26 = arith.constant 0 : index
      %c0_27 = arith.constant 0 : index
      %c0_28 = arith.constant 0 : index
      %49 = vector.load %arg4[%c0_26, %c0_27, %c0_28] : memref<1x8x128xf32, #tpu.memory_space<vmem>>, vector<1x8x128xf32>
      tpu.vector_store %arg4[%c0_26, %c0_27, %c0_28], %48 {strides = array<i32>} : memref<1x8x128xf32, #tpu.memory_space<vmem>>, vector<1x8x128xf32>,
    } else {
    }
    %c0 = arith.constant 0 : index
    %c0_1 = arith.constant 0 : index
    %3 = vector.load %arg3[%c0, %c0_1] : memref<32x128xi8, #tpu.memory_space<vmem>>, vector<32x128xi8>
    %4 = arith.extsi %3 : vector<32x128xi8> to vector<32x128xi32>
    %c0_i32_2 = arith.constant 0 : i32
    %5 = vector.broadcast %c0_i32_2 : i32 to vector<32x128xi32>
    %6 = arith.cmpi sge, %4, %5 : vector<32x128xi32>
    %c0_3 = arith.constant 0 : index
    %c0_4 = arith.constant 0 : index
    %c0_5 = arith.constant 0 : index
    %7 = vector.load %arg2[%c0_3, %c0_4, %c0_5] : memref<2x32x128xf32, #tpu.memory_space<vmem>>, vector<1x32x128xf32>
    %8 = vector.shape_cast %7 : vector<1x32x128xf32> to vector<32x128xf32>
    %c1 = arith.constant 1 : index
    %c0_6 = arith.constant 0 : index
    %c0_7 = arith.constant 0 : index
    %9 = vector.load %arg2[%c1, %c0_6, %c0_7] : memref<2x32x128xf32, #tpu.memory_space<vmem>>, vector<1x32x128xf32>
    %10 = vector.shape_cast %9 : vector<1x32x128xf32> to vector<32x128xf32>
    %11 = arith.subf %8, %10 : vector<32x128xf32>
    %c0_i32_8 = arith.constant 0 : i32
    %12 = vector.broadcast %c0_i32_8 : i32 to vector<32x128xi32>
    %13 = arith.cmpi eq, %4, %12 : vector<32x128xi32>
    %cst = arith.constant 0.000000e+00 : f32
    %14 = vector.broadcast %cst : f32 to vector<32x128xf32>
    %15 = arith.subf %14, %11 : vector<32x128xf32>
    %16 = arith.select %13, %11, %15 : vector<32x128xi1>, vector<32x128xf32>
    %17 = math.absf %16 : vector<32x128xf32>
    %cst_9 = arith.constant 0.000000e+00 : f32
    %18 = vector.broadcast %cst_9 : f32 to vector<32x128xf32>
    %19 = arith.subf %18, %17 : vector<32x128xf32>
    %20 = math.exp %19 : vector<32x128xf32>
    %cst_10 = arith.constant 0.000000e+00 : f32
    %21 = vector.broadcast %cst_10 : f32 to vector<32x128xf32>
    %22 = arith.subf %21, %16 : vector<32x128xf32>
    %cst_11 = arith.constant 0.000000e+00 : f32
    %23 = vector.broadcast %cst_11 : f32 to vector<32x128xf32>
    %24 = arith.maximumf %22, %23 : vector<32x128xf32>
    %cst_12 = arith.constant 1.000000e+00 : f32
    %25 = vector.broadcast %cst_12 : f32 to vector<32x128xf32>
    %26 = arith.addf %25, %20 : vector<32x128xf32>
    %27 = math.log %26 : vector<32x128xf32>
    %28 = arith.addf %24, %27 : vector<32x128xf32>
    %cst_13 = arith.constant 0.000000e+00 : f32
    %29 = vector.broadcast %cst_13 : f32 to vector<32x128xf32>
    %30 = arith.cmpf oge, %16, %29 : vector<32x128xf32>
    %cst_14 = arith.constant 1.000000e+00 : f32
    %31 = vector.broadcast %cst_14 : f32 to vector<32x128xf32>
    %32 = arith.select %30, %20, %31 : vector<32x128xi1>, vector<32x128xf32>
    %cst_15 = arith.constant 1.000000e+00 : f32
    %33 = vector.broadcast %cst_15 : f32 to vector<32x128xf32>
    %34 = arith.addf %33, %20 : vector<32x128xf32>
    %35 = arith.divf %32, %34 : vector<32x128xf32>
    %36 = arith.mulf %35, %35 : vector<32x128xf32>
    %cst_16 = arith.constant 2.500000e-01 : f32
    %37 = vector.broadcast %cst_16 : f32 to vector<32x128xf32>
    %38 = arith.mulf %37, %36 : vector<32x128xf32>
    %39 = arith.mulf %38, %28 : vector<32x128xf32>
    %cst_17 = arith.constant 0.000000e+00 : f32
    %40 = vector.broadcast %cst_17 : f32 to vector<32x128xf32>
    %41 = arith.select %6, %39, %40 : vector<32x128xi1>, vector<32x128xf32>
    %c0_18 = arith.constant 0 : index
    %c0_19 = arith.constant 0 : index
    %c0_20 = arith.constant 0 : index
    %42 = vector.load %arg4[%c0_18, %c0_19, %c0_20] : memref<1x8x128xf32, #tpu.memory_space<vmem>>, vector<1x8x128xf32>
    %43 = vector.shape_cast %41 : vector<32x128xf32> to vector<4x8x128xf32>
    %cst_21 = arith.constant dense<0.000000e+00> : vector<8x128xf32>
    %44 = vector.multi_reduction <add>, %43, %cst_21 [0] : vector<4x8x128xf32> to vector<8x128xf32>
    %45 = vector.shape_cast %44 : vector<8x128xf32> to vector<1x8x128xf32>
    %46 = arith.addf %42, %45 : vector<1x8x128xf32>
    %c0_22 = arith.constant 0 : index
    %c0_23 = arith.constant 0 : index
    %c0_24 = arith.constant 0 : index
    %47 = vector.load %arg4[%c0_22, %c0_23, %c0_24] : memref<1x8x128xf32, #tpu.memory_space<vmem>>, vector<1x8x128xf32>
    tpu.vector_store %arg4[%c0_22, %c0_23, %c0_24], %46 {strides = array<i32>} : memref<1x8x128xf32, #tpu.memory_space<vmem>>, vector<1x8x128xf32>,
    return
  }
  func.func @transform_0(%arg0: i32, %arg1: i32) -> (i32, i32, i32) {
    %c1_i32 = arith.constant 1 : i32
    %0 = arith.muli %arg0, %c1_i32 : i32
    %1 = arith.addi %0, %arg1 : i32
    %c0_i32 = arith.constant 0 : i32
    %c0_i32_0 = arith.constant 0 : i32
    %c0_i32_1 = arith.constant 0 : i32
    return %c0_i32, %1, %c0_i32_0 : i32, i32, i32
  }
  func.func @transform_1(%arg0: i32, %arg1: i32) -> (i32, i32) {
    %c1_i32 = arith.constant 1 : i32
    %0 = arith.muli %arg0, %c1_i32 : i32
    %1 = arith.addi %0, %arg1 : i32
    %c0_i32 = arith.constant 0 : i32
    %c0_i32_0 = arith.constant 0 : i32
    return %1, %c0_i32 : i32, i32
  }
  func.func @transform_2(%arg0: i32, %arg1: i32) -> (i32, i32, i32) {
    %c0_i32 = arith.constant 0 : i32
    %c0_i32_0 = arith.constant 0 : i32
    %c0_i32_1 = arith.constant 0 : i32
    return %arg0, %c0_i32, %c0_i32_0 : i32, i32, i32
  }
}

</mosaic_0001>

<bundles_post_ra>
// kernel: tpu_custom_call.1
= control target key start
LH: loop header
LB: loop body
LE: loop exit
PB: predicated region body
PF: predicated region fallthrough
CT: control target
= control target key end

     0   :  { %7 = vsyncpa [#allocation3], 0  ;;  %s367_s0 = inlined_call_operand.hbm [shape: f32[2,32,128], index: 0, kind: input, shape index: {}]   ;;  %s368_s1 = inlined_call_operand.hbm [shape: s8[32,128], index: 1, kind: input, shape index: {}]   ;;  %s369_s2 = inlined_call_operand.hbm [shape: f32[1,8,128], index: 2, kind: output, shape index: {}]  }
   0x1   :  { %8 = vsyncpa [#allocation6], 0 }
   0x2   :  { %9 = vsyncpa [#allocation4], 0  ;;  %s283_s9 = smov [#allocation2]   ;;  %s211_s13 = scalar_lea.hbm %s367_s0, 1024 }
   0x3   :  { %s19_s10 = sshll.u32 %s283_s9, 4  ;;  %p212_p0 = scmp.ne.s32.totalorder %s367_s0, %s211_s13  ;;  %s20_s10 = int_to_ptr.vmem [resolvable:$true] %s19_s10 }
   0x4   :  { %p215_p1 = scmp.lt.u32.totalorder %s211_s13, %s367_s0 }
   0x6   :  { %p217_p2 = pnand %p215_p1, %p212_p0 }
   0x8   :  { %220 = shalt.err (!%p217_p2)
}
   0x9   :  { %s221_s18 = scalar_lea.vmem %s20_s10, 1024  ;;  %p226_p4 = scmp.lt.s32.totalorder %s20_s10, %s20_s10 }
   0xa   :  { %p222_p3 = scmp.ne.s32.totalorder %s20_s10, %s221_s18  ;;  %p227_p5 = scmp.lt.s32.totalorder %s221_s18, %s221_s18 }
   0xc   :  { %p228_p6 = por %p227_p5, %p226_p4 }
   0xe   :  { %p229_p7 = pnand %p228_p6, %p222_p3 }
  0x10   :  { %232 = shalt.err (!%p229_p7)
}
  0x11   :  { %s284_s19 = smov 128   ;;  %s285_s20 = smov 8  }
  0x12   :  { %25 = dma.hbm_to_vmem [thread:$0]  %s367_s0, 1024, %s20_s10, [#allocation3], %s284_s19, %s284_s19, %s285_s20  }
  0x13   :  { %s286_s23 = smov [#allocation5]   ;;  %s233_s27 = scalar_lea.hbm %s368_s1, 128 }
  0x14   :  { %s35_s24 = sshll.u32 %s286_s23, 4  ;;  %p234_p8 = scmp.ne.s32.totalorder %s368_s1, %s233_s27  ;;  %s36_s24 = int_to_ptr.vmem [resolvable:$true] %s35_s24 }
  0x15   :  { %p237_p9 = scmp.lt.u32.totalorder %s233_s27, %s368_s1 }
  0x17   :  { %p239_p10 = pnand %p237_p9, %p234_p8 }
  0x19   :  { %242 = shalt.err (!%p239_p10)
}
  0x1a   :  { %s243_s4 = scalar_lea.vmem %s36_s24, 128  ;;  %p248_p12 = scmp.lt.s32.totalorder %s36_s24, %s36_s24 }
  0x1b   :  { %p244_p11 = scmp.ne.s32.totalorder %s36_s24, %s243_s4  ;;  %p249_p13 = scmp.lt.s32.totalorder %s243_s4, %s243_s4 }
  0x1d   :  { %p250_p0 = por %p249_p13, %p248_p12 }
  0x1f   :  { %p251_p1 = pnand %p250_p0, %p244_p11 }
  0x21   :  { %254 = shalt.err (!%p251_p1)
}
  0x22   :  { %38 = dma.hbm_to_vmem [thread:$0]  %s368_s1, 128, %s36_s24, [#allocation6]  }
  0x23   :  { %277 = dma.done.wait [#allocation3], 1024  }
  0x24   :  { %278 = vsyncadd [#allocation3], 4294966272 }
  0x25   :  { %279 = dma.done.wait [#allocation6], 128  }
  0x26   :  { %280 = vsyncadd [#allocation6], 4294967168  ;;  %v327_v0 = vld [vmem:[#allocation5] sm:$0xff]  ;;  %v63_v2 = vld [vmem:[#allocation2 + $0x8] sm:$0xff]  ;;  %s287_s1 = smov [#allocation7]  }
  0x27   :  { %v62_v1 = vld [vmem:[#allocation2] sm:$0xff]  ;;  %v54_v3 = vunpack.c.0.s8 %v327_v0  ;;  %v55_v4 = vunpack.c.1.s8 %v327_v0  ;;  %v56_v5 = vunpack.c.2.s8 %v327_v0  ;;  %v57_v6 = vunpack.c.3.s8 %v327_v0  ;;  %v64_v7 = vld [vmem:[#allocation2 + $0x10] sm:$0xff]  ;;  %v65_v8 = vld [vmem:[#allocation2 + $0x18] sm:$0xff]  ;;  %s171_s6 = sshll.u32 %s287_s1, 4  ;;  %s172_s6 = int_to_ptr.vmem [resolvable:$true] %s171_s6 }
  0x28   :  { %v67_v9 = vld [vmem:[#allocation2 + $0x20] sm:$0xff]  ;;  %v68_v10 = vld [vmem:[#allocation2 + $0x28] sm:$0xff]  ;;  %v69_v11 = vld [vmem:[#allocation2 + $0x30] sm:$0xff]  ;;  %s255_s7 = scalar_lea.vmem %s172_s6, 128  ;;  %p260_p3 = scmp.lt.s32.totalorder %s172_s6, %s172_s6 }
  0x29   :  { %v70_v12 = vld [vmem:[#allocation2 + $0x38] sm:$0xff]  ;;  %v71_v13 = vsub.f32 %v62_v1, %v67_v9  ;;  %v72_v14 = vsub.f32 %v63_v2, %v68_v10  ;;  %v73_v15 = vsub.f32 %v64_v7, %v69_v11  ;;  %vm75_vm0 = vcmp.eq.s32.totalorder %v54_v3, 0  ;;  %p256_p2 = scmp.ne.s32.totalorder %s172_s6, %s255_s7  ;;  %p261_p4 = scmp.lt.s32.totalorder %s255_s7, %s255_s7 }
  0x2a   :  { %v74_v16 = vsub.f32 %v65_v8, %v70_v12  ;;  %vm76_vm1 = vcmp.eq.s32.totalorder %v55_v4, 0  ;;  %vm77_vm2 = vcmp.eq.s32.totalorder %v56_v5, 0  ;;  %vm78_vm3 = vcmp.eq.s32.totalorder %v57_v6, 0 }
  0x2b   :  { %v79_v17 = vsub.f32 0.0, %v71_v13  ;;  %v80_v18 = vsub.f32 0.0, %v72_v14  ;;  %v81_v19 = vsub.f32 0.0, %v73_v15  ;;  %vm343_vm8 = vcmp.ge.s32.totalorder %v54_v3, 0  ;;  %p262_p5 = por %p261_p4, %p260_p3 }
  0x2c   :  { %v82_v20 = vsub.f32 0.0, %v74_v16  ;;  %vm59_vm9 = vcmp.ge.s32.totalorder %v55_v4, 0  ;;  %vm60_vm10 = vcmp.ge.s32.totalorder %v56_v5, 0  ;;  %vm61_vm11 = vcmp.ge.s32.totalorder %v57_v6, 0 }
  0x2d   :  { %v83_v21 = vsel %vm75_vm0, %v71_v13, %v79_v17  ;;  %v84_v22 = vsel %vm76_vm1, %v72_v14, %v80_v18  ;;  %v85_v23 = vsel %vm77_vm2, %v73_v15, %v81_v19  ;;  %p263_p6 = pnand %p262_p5, %p256_p2 }
  0x2e   :  { %v86_v24 = vsel %vm78_vm3, %v74_v16, %v82_v20  ;;  %v87_v25 = vand.u32 2147483647, %v83_v21  ;;  %v88_v26 = vand.u32 2147483647, %v84_v22  ;;  %v89_v27 = vand.u32 2147483647, %v85_v23 }
  0x2f   :  { %v90_v28 = vand.u32 2147483647, %v86_v24  ;;  %v103_v45 = vsub.f32 0.0, %v83_v21  ;;  %vm127_vm4 = vcmp.ge.f32.partialorder %v83_v21, 0.0  ;;  %v104_v47 = vsub.f32 0.0, %v84_v22 }
  0x30   :  { %v91_v29 = vsub.f32 0.0, %v87_v25  ;;  %v92_v30 = vsub.f32 0.0, %v88_v26  ;;  %v93_v31 = vsub.f32 0.0, %v89_v27  ;;  %vm128_vm5 = vcmp.ge.f32.partialorder %v84_v22, 0.0 }
  0x31   :  { %v94_v32 = vsub.f32 0.0, %v90_v28  ;;  %v105_v49 = vsub.f32 0.0, %v85_v23  ;;  %vm129_vm6 = vcmp.ge.f32.partialorder %v85_v23, 0.0  ;;  %v106_v51 = vsub.f32 0.0, %v86_v24 }
  0x32   :  { %v95_v33 = vmul.f32 1.442695, %v91_v29  ;;  %v97_v34 = vmul.f32 1.442695, %v92_v30  ;;  %v99_v35 = vmul.f32 1.442695, %v93_v31 }
  0x33   :  { %v101_v36 = vmul.f32 1.442695, %v94_v32  ;;  %vm130_vm7 = vcmp.ge.f32.partialorder %v86_v24, 0.0  ;;  %v107_v54 = vmax.f32 %v103_v45, 0.0  ;;  %v108_v58 = vmax.f32 %v104_v47, 0.0 }
  0x34   :  { %187 = vpow2.f32 %v95_v33  ;;  %v109_v62 = vmax.f32 %v105_v49, 0.0  ;;  %v110_v8 = vmax.f32 %v106_v51, 0.0 }
  0x35   :  { %189 = vpow2.f32 %v97_v34 }
  0x36   :  { %191 = vpow2.f32 %v99_v35 }
  0x37   :  { %193 = vpow2.f32 %v101_v36 }
  0x3e   :  { %v188_v37 = vpop.eup %187 }
  0x3f   :  { %v190_v38 = vpop.eup %189  ;;  %v111_v39 = vadd.f32 1.0, %v188_v37  ;;  %v131_v52 = vsel %vm127_vm4, %v188_v37, 1.0 }
  0x40   :  { %v192_v40 = vpop.eup %191  ;;  %v112_v41 = vadd.f32 1.0, %v190_v38  ;;  %v132_v56 = vsel %vm128_vm5, %v190_v38, 1.0 }
  0x41   :  { %v194_v42 = vpop.eup %193  ;;  %v113_v43 = vadd.f32 1.0, %v192_v40  ;;  %195 = vlog2.f32 %v111_v39  ;;  %v133_v60 = vsel %vm129_vm6, %v192_v40, 1.0 }
  0x42   :  { %v114_v44 = vadd.f32 1.0, %v194_v42  ;;  %197 = vlog2.f32 %v112_v41  ;;  %v134_v1 = vsel %vm130_vm7, %v194_v42, 1.0 }
  0x43   :  { %199 = vlog2.f32 %v113_v43 }
  0x44   :  { %201 = vlog2.f32 %v114_v44 }
  0x45   :  { %203 = vrcp.f32 %v111_v39 }
  0x46   :  { %205 = vrcp.f32 %v112_v41 }
  0x47   :  { %207 = vrcp.f32 %v113_v43 }
  0x48   :  { %209 = vrcp.f32 %v114_v44 }
  0x4b   :  { %v196_v46 = vpop.eup %195 }
  0x4c   :  { %v198_v48 = vpop.eup %197  ;;  %v116_v55 = vmul.f32 0.6931472, %v196_v46 }
  0x4d   :  { %v200_v50 = vpop.eup %199  ;;  %v118_v59 = vmul.f32 0.6931472, %v198_v48 }
  0x4e   :  { %v202_v53 = vpop.eup %201  ;;  %v120_v63 = vmul.f32 0.6931472, %v200_v50  ;;  %v123_v12 = vadd.f32 %v116_v55, %v107_v54 }
  0x4f   :  { %v204_v57 = vpop.eup %203  ;;  %v122_v9 = vmul.f32 0.6931472, %v202_v53  ;;  %v124_v15 = vadd.f32 %v118_v59, %v108_v58 }
  0x50   :  { %v206_v61 = vpop.eup %205  ;;  %v136_v2 = vmul.f32 %v204_v57, %v131_v52  ;;  %v125_v18 = vadd.f32 %v120_v63, %v109_v62 }
  0x51   :  { %v208_v7 = vpop.eup %207  ;;  %v138_v10 = vmul.f32 %v206_v61, %v132_v56  ;;  %v126_v22 = vadd.f32 %v122_v9, %v110_v8 }
  0x52   :  { %v210_v11 = vpop.eup %209  ;;  %v140_v13 = vmul.f32 %v208_v7, %v133_v60  ;;  %v143_v14 = vmul.f32 %v136_v2, %v136_v2 }
  0x53   :  { %v142_v16 = vmul.f32 %v210_v11, %v134_v1  ;;  %v144_v17 = vmul.f32 %v138_v10, %v138_v10 }
  0x54   :  { %v145_v19 = vmul.f32 %v140_v13, %v140_v13  ;;  %v147_v20 = vmul.f32 0.25, %v143_v14 }
  0x55   :  { %v146_v23 = vmul.f32 %v142_v16, %v142_v16  ;;  %v148_v24 = vmul.f32 0.25, %v144_v17 }
  0x56   :  { %v149_v25 = vmul.f32 0.25, %v145_v19  ;;  %v151_v26 = vmul.f32 %v147_v20, %v123_v12 }
  0x57   :  { %v150_v27 = vmul.f32 0.25, %v146_v23  ;;  %v152_v28 = vmul.f32 %v148_v24, %v124_v15 }
  0x58   :  { %v153_v3 = vmul.f32 %v149_v25, %v125_v18  ;;  %v155_v29 = vsel %vm343_vm8, %v151_v26, 0.0 }
  0x59   :  { %v154_v30 = vmul.f32 %v150_v27, %v126_v22  ;;  %v156_v31 = vsel %vm59_vm9, %v152_v28, 0.0 }
  0x5a   :  { %v157_v32 = vsel %vm60_vm10, %v153_v3, 0.0  ;;  %v160_v33 = vadd.f32 %v156_v31, %v155_v29 }
  0x5b   :  { %v158_v34 = vsel %vm61_vm11, %v154_v30, 0.0 }
  0x5c   :  { %v161_v4 = vadd.f32 %v160_v33, %v157_v32 }
  0x5e   :  { %v162_v35 = vadd.f32 %v161_v4, %v158_v34 }
  0x60   :  { %164 = vst [vmem:[#allocation7] sm:$0xff] %v162_v35 }
  0x61   :  { %266 = shalt.err (!%p263_p6)
}
  0x62   :  { %s267_s10 = scalar_lea.hbm %s369_s2, 128 }
  0x63   :  { %p268_p7 = scmp.ne.s32.totalorder %s369_s2, %s267_s10  ;;  %p271_p8 = scmp.lt.u32.totalorder %s267_s10, %s369_s2 }
  0x65   :  { %p273_p9 = pnand %p271_p8, %p268_p7 }
  0x67   :  { %276 = shalt.err (!%p273_p9)
}
  0x68   :  { %174 = dma.vmem_to_hbm [thread:$0]  %s172_s6, 128, %s369_s2, [#allocation4]  }
  0x69   :  { %281 = dma.done.wait [#allocation4], 128  }
  0x6a   :  { %282 = vsyncadd [#allocation4], 4294967168 }
  0x6b   :  { %178 = vsyncpa [#allocation3], 1 }
  0x6c   :  { %179 = vsyncpa [#allocation6], 1 }
  0x6d   :  { %180 = vsyncpa [#allocation4], 1 }

</bundles_post_ra>
